<compile_context>
chip_gen: v7x
topology: tpu7x:2x2x1
jax: 0.10.0
libtpu: 0.0.40
codegen_flags: <defaults>
</compile_context>

<pallas_src>
import functools

import jax
import jax.numpy as jnp
from jax.experimental import pallas as pl
from jax.experimental.pallas import tpu as pltpu


EMB_PAD = 128  # lane-dense embedding width inside the kernels (>= true D)
_FUSED_FOOTPRINT_LIMIT = 12 * 1024 * 1024  # conservative across v5e/v6e/v7x


def _round_up(x, m):
    return (x + m - 1) // m * m


# ----------------------------------------------------------------------------
# Fused kernel (small graphs): everything resident in VMEM, no grid.
#   acc = e0; e1 = A@e0; acc += e1; e2 = A@e1; acc += e2; out = acc / 3
# ----------------------------------------------------------------------------
def _lightgcn_fused_kernel(a_ref, x_ref, o_ref):
    a = a_ref[...]                                    # [N, N] bf16 (MXU input)
    e0 = x_ref[...]                                   # [N, Dp] f32
    acc = e0                                          # incremental accumulation
    e1 = jnp.dot(a, e0.astype(jnp.bfloat16), preferred_element_type=jnp.float32)
    acc = acc + e1
    e2 = jnp.dot(a, e1.astype(jnp.bfloat16), preferred_element_type=jnp.float32)
    acc = acc + e2
    o_ref[...] = (acc * (1.0 / 3.0)).astype(o_ref.dtype)


def _fused_lightgcn_call(a_bf16, x_pad):
    n, dp = x_pad.shape
    # VMEM footprint: A (bf16) + x/acc/out slabs (f32).
    vmem_bytes = n * n * 2 + 3 * n * dp * 4
    flops = 2 * (2 * n * n * dp)                     # two MXU matmuls
    bytes_accessed = n * n * 2 + 2 * n * dp * 4
    return pl.pallas_call(
        _lightgcn_fused_kernel,
        out_shape=jax.ShapeDtypeStruct((n, dp), jnp.float32),
        in_specs=[
            pl.BlockSpec(memory_space=pltpu.MemorySpace.VMEM),  # A_hat (bf16)
            pl.BlockSpec(memory_space=pltpu.MemorySpace.VMEM),  # e0 (f32, padded)
        ],
        out_specs=pl.BlockSpec(memory_space=pltpu.MemorySpace.VMEM),
        compiler_params=pltpu.CompilerParams(
            vmem_limit_bytes=int(2 * vmem_bytes + 8 * 1024 * 1024)),
        cost_estimate=pl.CostEstimate(
            flops=flops, transcendentals=0, bytes_accessed=bytes_accessed),
    )(a_bf16, x_pad)
    # NOTE: single grid point -> one TensorCore.  At this footprint the call is
    # dispatch/DMA-bound; the tiled path below is the multi-core path.


# ----------------------------------------------------------------------------
# Tiled fallback (large graphs): one LGConv layer per pallas_call.
#   grid = (M_tiles, K_tiles); M "parallel" (v7x 2-TC sharding), K "arbitrary".
# ----------------------------------------------------------------------------
def _lgconv_kernel(a_ref, x_ref, o_ref, acc_ref):
    # e_out[tile_i] = sum_k A[tile_i, tile_k] @ X[tile_k]
    @pl.when(pl.program_id(1) == 0)
    def _():
        acc_ref[...] = jnp.zeros_like(acc_ref)

    acc_ref[...] += jnp.dot(a_ref[...], x_ref[...],
                            preferred_element_type=jnp.float32)

    @pl.when(pl.program_id(1) == pl.num_programs(1) - 1)
    def _():
        o_ref[...] = acc_ref[...].astype(o_ref.dtype)


def _lgconv_mean_kernel(a_ref, x_ref, e0_ref, e1_ref, o_ref, acc_ref):
    # out[tile_i] = (e0[tile_i] + e1[tile_i] + sum_k A[tile_i,tile_k] @ e1[tile_k]) / 3
    @pl.when(pl.program_id(1) == 0)
    def _():
        acc_ref[...] = jnp.zeros_like(acc_ref)

    acc_ref[...] += jnp.dot(a_ref[...], x_ref[...].astype(jnp.bfloat16),
                            preferred_element_type=jnp.float32)

    @pl.when(pl.program_id(1) == pl.num_programs(1) - 1)
    def _():
        o_ref[...] = ((e0_ref[...] + e1_ref[...] + acc_ref[...])
                      * (1.0 / 3.0)).astype(o_ref.dtype)


def _pick_tiles():
    """Generation-aware (tm, tk) for the tiled fallback; tk is a multiple of tm."""
    try:
        kind = jax.devices()[0].device_kind.lower()
    except Exception:  # pragma: no cover - defensive
        kind = ""
    if "v7" in kind:
        # v7x: only 64 MiB VMEM (32 MiB scoped default) -> halve the tile
        # budget; the "parallel" M axis shards row tiles across its 2 TCs.
        return 256, 512
    # v5e / v6e: 128 MiB VMEM -> bigger tiles amortize per-step overhead.
    return 512, 1024


def _tiled_lightgcn_call(a_bf16, x_pad, tm, tk):
    n, dp = x_pad.shape
    assert tk % tm == 0
    n_pad = _round_up(n, tk)
    if n_pad != n:
        # Zero padding is exact: padded rows/cols of A and padded rows of X are
        # zero, so real rows of the output are unchanged.
        a_bf16 = jnp.pad(a_bf16, ((0, n_pad - n), (0, n_pad - n)))
        x_pad = jnp.pad(x_pad, ((0, n_pad - n), (0, 0)))
    grid = (n_pad // tm, n_pad // tk)
    x_bf16 = x_pad.astype(jnp.bfloat16)

    compiler_params = pltpu.CompilerParams(
        dimension_semantics=("parallel", "arbitrary"),
        vmem_limit_bytes=32 * 1024 * 1024)

    # ---- Layer 1: e1 = A @ e0 -------------------------------------------
    e1 = pl.pallas_call(
        _lgconv_kernel,
        out_shape=jax.ShapeDtypeStruct((n_pad, dp), jnp.float32),
        grid_spec=pltpu.PrefetchScalarGridSpec(
            num_scalar_prefetch=0, grid=grid,
            in_specs=[pl.BlockSpec((tm, tk), lambda i, k: (i, k)),   # A tile (bf16)
                      pl.BlockSpec((tk, dp), lambda i, k: (k, 0))],  # e0 K-tile (bf16)
            out_specs=pl.BlockSpec((tm, dp), lambda i, k: (i, 0)),
            scratch_shapes=[pltpu.VMEM((tm, dp), jnp.float32)]),
        compiler_params=compiler_params,
        cost_estimate=pl.CostEstimate(
            flops=2 * n_pad * n_pad * dp, transcendentals=0,
            bytes_accessed=n_pad * n_pad * 2 + n_pad * dp * 2 + n_pad * dp * 4),
    )(a_bf16, x_bf16)

    # ---- Layer 2 + mean: out = (e0 + e1 + A @ e1) / 3 ---------------------
    out_pad = pl.pallas_call(
        _lgconv_mean_kernel,
        out_shape=jax.ShapeDtypeStruct((n_pad, dp), jnp.float32),
        grid_spec=pltpu.PrefetchScalarGridSpec(
            num_scalar_prefetch=0, grid=grid,
            in_specs=[pl.BlockSpec((tm, tk), lambda i, k: (i, k)),   # A tile (bf16)
                      pl.BlockSpec((tk, dp), lambda i, k: (k, 0)),   # e1 K-tile (f32)
                      pl.BlockSpec((tm, dp), lambda i, k: (i, 0)),   # e0 M-tile (f32)
                      pl.BlockSpec((tm, dp), lambda i, k: (i, 0))],  # e1 M-tile (f32)
            out_specs=pl.BlockSpec((tm, dp), lambda i, k: (i, 0)),
            scratch_shapes=[pltpu.VMEM((tm, dp), jnp.float32)]),
        compiler_params=compiler_params,
        cost_estimate=pl.CostEstimate(
            flops=2 * n_pad * n_pad * dp, transcendentals=0,
            bytes_accessed=(n_pad * n_pad * 2 + n_pad * dp * 4
                            + 2 * n_pad * dp * 4 + n_pad * dp * 4)),
    )(a_bf16, e1, x_pad, e1)

    return out_pad[:n]
    # TODO(synk): for graphs far beyond a few thousand nodes, replace the dense
    # A_hat stream with a CSR/SpMM variant using PrefetchScalarGridSpec scalar
    # prefetch of column-block ids so only nonzero blocks are DMA'd.


# ----------------------------------------------------------------------------
# LightGCN forward (glue + kernels)
# ----------------------------------------------------------------------------
def build_normalized_adjacency(edge_index, num_nodes):
    """Dense A_hat equivalent to PyG gcn_norm(edge_index, add_self_loops=False).

    edge_index: int32 [2, E]; row = source, col = destination.
    A_hat[dst, src] = deg(dst)^-1/2 * deg(src)^-1/2
    """
    row, col = edge_index[0], edge_index[1]
    ones = jnp.ones(row.shape, dtype=jnp.float32)
    deg = jnp.zeros((num_nodes,), jnp.float32).at[col].add(ones)
    dinv = jnp.where(deg > 0, jax.lax.rsqrt(jnp.maximum(deg, 1e-12)), 0.0)
    vals = dinv[row] * dinv[col]
    a_hat = jnp.zeros((num_nodes, num_nodes), jnp.float32).at[col, row].add(vals)
    return a_hat


def _pad_embedding(emb):
    n, d = emb.shape
    if d < EMB_PAD:
        emb = jnp.pad(emb, ((0, 0), (0, EMB_PAD - d)))
    return emb


@functools.partial(jax.jit, static_argnames=("force_tiled",))
def lightgcn_forward(emb_weight, a_hat, force_tiled=False):
    """LightGCN.forward(x=None, edge_index) with num_layers=2.

    a_hat may be f32 or bf16; it is fed to the MXU as bf16 either way.
    """
    n, d = emb_weight.shape
    assert a_hat.shape == (n, n), "A_hat must be [N, N]"
    a_bf16 = a_hat.astype(jnp.bfloat16)
    x_pad = _pad_embedding(emb_weight.astype(jnp.float32))   # lane-dense D=128

    footprint = n * n * 2 + 3 * n * EMB_PAD * 4
    if (not force_tiled) and footprint <= _FUSED_FOOTPRINT_LIMIT:
        out_pad = _fused_lightgcn_call(a_bf16, x_pad)
    else:
        tm, tk = _pick_tiles()
        out_pad = _tiled_lightgcn_call(a_bf16, x_pad, tm, tk)
    return out_pad[:n, :d]


def lightgcn_forward_ref(emb_weight, a_hat):
    e0 = emb_weight
    e1 = a_hat @ e0
    e2 = a_hat @ e1
    return (e0 + e1 + e2) / 3.0


# ----------------------------------------------------------------------------
# Main
# ----------------------------------------------------------------------------
if __name__ == "__main__":
    key = jax.random.PRNGKey(0)

    def make_graph(k, num_users, num_items, num_edges, embedding_dim):
        num_nodes = num_users + num_items
        k_emb, k_u, k_i = jax.random.split(k, 3)
        # Xavier-uniform init of the embedding table (torch.nn.init.xavier_uniform_).
        bound = float(jnp.sqrt(6.0 / (num_nodes + embedding_dim)))
        emb = jax.random.uniform(
            k_emb, (num_nodes, embedding_dim), jnp.float32, -bound, bound)
        # Deterministic bipartite interaction graph, both directions (undirected).
        users = jax.random.randint(k_u, (num_edges,), 0, num_users)
        items = jax.random.randint(k_i, (num_edges,), num_users, num_nodes)
        edge_index = jnp.stack(
            [jnp.concatenate([users, items]), jnp.concatenate([items, users])],
            axis=0,
        ).astype(jnp.int32)
        return emb, build_normalized_adjacency(edge_index, num_nodes)

    k1, k2 = jax.random.split(key)

    # --- Test 1: small graph -> fused, fully VMEM-resident kernel ----------
    emb1, a1 = make_graph(k1, 64, 192, 1024, 64)          # N=256, D=64
    out1 = jax.block_until_ready(lightgcn_forward(emb1, a1.astype(jnp.bfloat16)))
    ref1 = lightgcn_forward_ref(emb1, a1)
    assert out1.shape == emb1.shape
    assert jnp.allclose(out1, ref1, atol=2e-2, rtol=2e-2), "fused mismatch vs ref"

    # --- Test 2: exercise the tiled / multi-core fallback path -------------
    emb2, a2 = make_graph(k2, 256, 768, 4096, 64)         # N=1024, D=64
    out2 = jax.block_until_ready(
        lightgcn_forward(emb2, a2.astype(jnp.bfloat16), force_tiled=True))
    ref2 = lightgcn_forward_ref(emb2, a2)
    assert out2.shape == emb2.shape
    assert jnp.allclose(out2, ref2, atol=2e-2, rtol=2e-2), "tiled mismatch vs ref"

    # TODO(synk): decode() (pairwise dot products for edge ranking) is a tiny
    # gather+reduce outside the forward hot path; left in plain JAX if needed.
    print("KERNEL_OK")
</pallas_src>

<mosaic_0001>
module attributes {stable_mosaic.version = 11 : i64} {
  func.func @_lightgcn_fused_kernel(%arg0: memref<256x256xbf16, #tpu.memory_space<vmem>>, %arg1: memref<256x128xf32, #tpu.memory_space<vmem>>, %arg2: memref<256x128xf32, #tpu.memory_space<vmem>>) attributes {dimension_semantics = [], scalar_prefetch = 0 : i64, scratch_operands = 0 : i64, tpu.core_type = #tpu.core_type<tc>} {
    %c0 = arith.constant 0 : index
    %c0_0 = arith.constant 0 : index
    %0 = vector.load %arg0[%c0, %c0_0] : memref<256x256xbf16, #tpu.memory_space<vmem>>, vector<256x256xbf16>
    %c0_1 = arith.constant 0 : index
    %c0_2 = arith.constant 0 : index
    %1 = vector.load %arg1[%c0_1, %c0_2] : memref<256x128xf32, #tpu.memory_space<vmem>>, vector<256x128xf32>
    %2 = arith.truncf %1 : vector<256x128xf32> to vector<256x128xbf16>
    %cst = arith.constant dense<0.000000e+00> : vector<256x128xf32>
    %3 = tpu.matmul %0, %2, %cst {dimension_numbers = #tpu.dot_dimension_numbers<[1], [0], [0], [1], [0, 0, 1, 1], [], []>} : vector<256x256xbf16>, vector<256x128xbf16>, vector<256x128xf32> -> vector<256x128xf32>
    %4 = arith.addf %1, %3 : vector<256x128xf32>
    %5 = arith.truncf %3 : vector<256x128xf32> to vector<256x128xbf16>
    %cst_3 = arith.constant dense<0.000000e+00> : vector<256x128xf32>
    %6 = tpu.matmul %0, %5, %cst_3 {dimension_numbers = #tpu.dot_dimension_numbers<[1], [0], [0], [1], [0, 0, 1, 1], [], []>} : vector<256x256xbf16>, vector<256x128xbf16>, vector<256x128xf32> -> vector<256x128xf32>
    %7 = arith.addf %4, %6 : vector<256x128xf32>
    %cst_4 = arith.constant 0.333333343 : f32
    %8 = vector.broadcast %cst_4 : f32 to vector<256x128xf32>
    %9 = arith.mulf %7, %8 : vector<256x128xf32>
    %c0_5 = arith.constant 0 : index
    %c0_6 = arith.constant 0 : index
    %10 = vector.load %arg2[%c0_5, %c0_6] : memref<256x128xf32, #tpu.memory_space<vmem>>, vector<256x128xf32>
    tpu.vector_store %arg2[%c0_5, %c0_6], %9 {strides = array<i32>} : memref<256x128xf32, #tpu.memory_space<vmem>>, vector<256x128xf32>,
    return
  }
}

</mosaic_0001>

<bundles_post_ra>
// kernel: lightgcn_forward.1
= control target key start
LH: loop header
LB: loop body
LE: loop exit
PB: predicated region body
PF: predicated region fallthrough
CT: control target
= control target key end

     0   :  { %s1727_s1 = inlined_call_operand.vmem [shape: f32[256,128], index: 1, kind: input, shape index: {}]   ;;  %s1728_s0 = inlined_call_operand.vmem [shape: bf16[256,256], index: 0, kind: input, shape index: {}]   ;;  %s1729_s2 = inlined_call_operand.vmem [shape: f32[256,128], index: 2, kind: output, shape index: {}]  }
   0x1   :  { %v1044_v0 = vld [vmem:[%s1727_s1 + $0x80] sm:$0xff]  ;;  %v1049_v1 = vld [vmem:[%s1727_s1 + $0x88] sm:$0xff]  ;;  %v1066_v5 = vld [vmem:[%s1727_s1 + $0x90] sm:$0xff] }
   0x2   :  { %1770 = vst [vmem:[#allocation2_spill] sm:$0xff] %v1044_v0  ;;  %1771 = vst [vmem:[#allocation3_spill] sm:$0xff] %v1049_v1  ;;  %v1054_v2 = vld [vmem:[%s1727_s1] sm:$0xff]  ;;  %v84_v3 = vpack.c.bf16 %v1049_v1, %v1044_v0  ;;  %v1061_v4 = vld [vmem:[%s1727_s1 + $0x8] sm:$0xff] }
   0x3   :  { %1772 = vst [vmem:[#allocation4_spill] sm:$0xff] %v1066_v5  ;;  %v1071_v6 = vld [vmem:[%s1727_s1 + $0x98] sm:$0xff]  ;;  %v76_v7 = vpack.c.bf16 %v1061_v4, %v1054_v2  ;;  %v1080_v9 = vld [vmem:[%s1727_s1 + $0x10] sm:$0xff]  ;;  %v1090_v11 = vld [vmem:[%s1727_s1 + $0xa0] sm:$0xff] }
   0x4   :  { %1773 = vst [vmem:[#allocation5_spill] sm:$0xff] %v1071_v6  ;;  %v85_v8 = vpack.c.bf16 %v1071_v6, %v1066_v5  ;;  %v1085_v10 = vld [vmem:[%s1727_s1 + $0x18] sm:$0xff]  ;;  %1775 = vst [vmem:[#allocation7_spill] sm:$0xff] %v1090_v11  ;;  %754 = vmatprep.subr.bf16.mxu0 %v84_v3  ;;  %v1095_v12 = vld [vmem:[%s1727_s1 + $0xa8] sm:$0xff] }
   0x5   :  { %1774 = vst [vmem:[#allocation6_spill] sm:$0xff] %v1085_v10  ;;  %1776 = vst [vmem:[#allocation8_spill] sm:$0xff] %v1095_v12  ;;  %755 = vmatpush3.bf16.msra.mxu0 %v76_v7  ;;  %v77_v13 = vpack.c.bf16 %v1085_v10, %v1080_v9  ;;  %v86_v14 = vpack.c.bf16 %v1095_v12, %v1090_v11  ;;  %v1104_v15 = vld [vmem:[%s1727_s1 + $0x20] sm:$0xff]  ;;  %v1109_v16 = vld [vmem:[%s1727_s1 + $0x28] sm:$0xff] }
   0x6   :  { %756 = vmatprep.subr.bf16.mxu0 %v85_v8  ;;  %1777 = vst [vmem:[#allocation9_spill] sm:$0xff] %v1104_v15  ;;  %1778 = vst [vmem:[#allocation10_spill] sm:$0xff] %v1109_v16  ;;  %v1114_v17 = vld [vmem:[%s1727_s1 + $0xb0] sm:$0xff]  ;;  %v1119_v18 = vld [vmem:[%s1727_s1 + $0xb8] sm:$0xff]  ;;  %v78_v19 = vpack.c.bf16 %v1109_v16, %v1104_v15 }
   0x7   :  { %1779 = vst [vmem:[#allocation11_spill] sm:$0xff] %v1114_v17  ;;  %1780 = vst [vmem:[#allocation12_spill] sm:$0xff] %v1119_v18  ;;  %v87_v20 = vpack.c.bf16 %v1119_v18, %v1114_v17  ;;  %v1128_v21 = vld [vmem:[%s1727_s1 + $0x30] sm:$0xff]  ;;  %v1133_v22 = vld [vmem:[%s1727_s1 + $0x38] sm:$0xff] }
   0x8   :  { %1781 = vst [vmem:[#allocation13_spill] sm:$0xff] %v1128_v21  ;;  %1782 = vst [vmem:[#allocation14_spill] sm:$0xff] %v1133_v22  ;;  %v1138_v23 = vld [vmem:[%s1727_s1 + $0xc0] sm:$0xff]  ;;  %v1143_v24 = vld [vmem:[%s1727_s1 + $0xc8] sm:$0xff]  ;;  %v79_v26 = vpack.c.bf16 %v1133_v22, %v1128_v21 }
   0x9   :  { %757 = vmatpush3.bf16.msra.mxu0 %v77_v13  ;;  %1783 = vst [vmem:[#allocation15_spill] sm:$0xff] %v1138_v23  ;;  %1784 = vst [vmem:[#allocation16_spill] sm:$0xff] %v1143_v24  ;;  %v980_v25 = vld [vmem:[%s1728_s0 + $0x4] ss:$8 sps:$4 sm:$0xff]   ;;  %v88_v28 = vpack.c.bf16 %v1143_v24, %v1138_v23  ;;  %v1165_v30 = vld [vmem:[%s1727_s1 + $0xd0] sm:$0xff] }
   0xa   :  { %758 = vmatprep.subr.bf16.mxu0 %v86_v14  ;;  %v1153_v27 = vld [vmem:[%s1727_s1 + $0x40] sm:$0xff]  ;;  %v1160_v29 = vld [vmem:[%s1727_s1 + $0x48] sm:$0xff]  ;;  %284 = vmatprep.mubr.bf16.mxu0 %v980_v25  ;;  %1787 = vst [vmem:[#allocation19_spill] sm:$0xff] %v1165_v30  ;;  %v1170_v31 = vld [vmem:[%s1727_s1 + $0xd8] sm:$0xff] }
   0xb   :  { %1785 = vst [vmem:[#allocation17_spill] sm:$0xff] %v1153_v27  ;;  %1786 = vst [vmem:[#allocation18_spill] sm:$0xff] %v1160_v29  ;;  %493 = vmatprep.mubr.bf16.mxu1 %v980_v25  ;;  %v80_v32 = vpack.c.bf16 %v1160_v29, %v1153_v27  ;;  %v1177_v33 = vld [vmem:[%s1727_s1 + $0x50] sm:$0xff]  ;;  %v89_v34 = vpack.c.bf16 %v1170_v31, %v1165_v30  ;;  %v1184_v35 = vld [vmem:[%s1727_s1 + $0x58] sm:$0xff] }
   0xc   :  { %1788 = vst [vmem:[#allocation20_spill] sm:$0xff] %v1170_v31  ;;  %1789 = vst [vmem:[#allocation21_spill] sm:$0xff] %v1177_v33  ;;  %v1189_v36 = vld [vmem:[%s1727_s1 + $0xe0] sm:$0xff]  ;;  %v1194_v37 = vld [vmem:[%s1727_s1 + $0xe8] sm:$0xff]  ;;  %v81_v38 = vpack.c.bf16 %v1184_v35, %v1177_v33 }
   0xd   :  { %759 = vmatpush3.bf16.msra.mxu0 %v78_v19  ;;  %1790 = vst [vmem:[#allocation22_spill] sm:$0xff] %v1184_v35  ;;  %1791 = vst [vmem:[#allocation23_spill] sm:$0xff] %v1189_v36  ;;  %v1201_v39 = vld [vmem:[%s1727_s1 + $0x60] sm:$0xff]  ;;  %v90_v40 = vpack.c.bf16 %v1194_v37, %v1189_v36  ;;  %v1208_v41 = vld [vmem:[%s1727_s1 + $0x68] sm:$0xff] }
   0xe   :  { %760 = vmatprep.subr.bf16.mxu0 %v87_v20  ;;  %1792 = vst [vmem:[#allocation24_spill] sm:$0xff] %v1194_v37  ;;  %1793 = vst [vmem:[#allocation25_spill] sm:$0xff] %v1201_v39  ;;  %v1213_v42 = vld [vmem:[%s1727_s1 + $0xf0] sm:$0xff]  ;;  %v1218_v43 = vld [vmem:[%s1727_s1 + $0xf8] sm:$0xff]  ;;  %v82_v44 = vpack.c.bf16 %v1208_v41, %v1201_v39 }
   0xf   :  { %1794 = vst [vmem:[#allocation26_spill] sm:$0xff] %v1208_v41  ;;  %1795 = vst [vmem:[#allocation27_spill] sm:$0xff] %v1213_v42  ;;  %v1225_v45 = vld [vmem:[%s1727_s1 + $0x70] sm:$0xff]  ;;  %v91_v46 = vpack.c.bf16 %v1218_v43, %v1213_v42  ;;  %v1232_v47 = vld [vmem:[%s1727_s1 + $0x78] sm:$0xff] }
  0x10   :  { %1796 = vst [vmem:[#allocation28_spill] sm:$0xff] %v1218_v43  ;;  %1797 = vst [vmem:[#allocation29_spill] sm:$0xff] %v1225_v45  ;;  %v83_v48 = vpack.c.bf16 %v1232_v47, %v1225_v45  ;;  %v1239_v49 = vld [vmem:[%s1728_s0] ss:$8 sps:$4 sm:$0xff]   ;;  %v1244_v50 = vld [vmem:[%s1728_s0 + $0x14] ss:$8 sps:$4 sm:$0xff]  }
  0x11   :  { %761 = vmatpush3.bf16.msra.mxu0 %v79_v26  ;;  %1798 = vst [vmem:[#allocation30_spill] sm:$0xff] %v1232_v47  ;;  %v1251_v51 = vld [vmem:[%s1728_s0 + $0x10] ss:$8 sps:$4 sm:$0xff]   ;;  %v1256_v52 = vld [vmem:[%s1728_s0 + $0x24] ss:$8 sps:$4 sm:$0xff]  }
  0x12   :  { %762 = vmatprep.subr.bf16.mxu0 %v88_v28  ;;  %v1263_v53 = vld [vmem:[%s1728_s0 + $0x20] ss:$8 sps:$4 sm:$0xff]   ;;  %v1268_v54 = vld [vmem:[%s1728_s0 + $0x34] ss:$8 sps:$4 sm:$0xff]   ;;  %v1275_v55 = vld [vmem:[%s1728_s0 + $0x30] ss:$8 sps:$4 sm:$0xff]  }
  0x13   :  { %v1280_v56 = vld [vmem:[%s1728_s0 + $0x44] ss:$8 sps:$4 sm:$0xff]   ;;  %v1287_v57 = vld [vmem:[%s1728_s0 + $0x40] ss:$8 sps:$4 sm:$0xff]   ;;  %v1292_v58 = vld [vmem:[%s1728_s0 + $0x54] ss:$8 sps:$4 sm:$0xff]  }
  0x14   :  { %v1299_v59 = vld [vmem:[%s1728_s0 + $0x50] ss:$8 sps:$4 sm:$0xff]   ;;  %v1304_v60 = vld [vmem:[%s1728_s0 + $0x64] ss:$8 sps:$4 sm:$0xff]   ;;  %v1311_v61 = vld [vmem:[%s1728_s0 + $0x60] ss:$8 sps:$4 sm:$0xff]  }
  0x15   :  { %763 = vmatpush3.bf16.msra.mxu0 %v80_v32  ;;  %v1316_v62 = vld [vmem:[%s1728_s0 + $0x74] ss:$8 sps:$4 sm:$0xff]   ;;  %v1323_v63 = vld [vmem:[%s1728_s0 + $0x70] ss:$8 sps:$4 sm:$0xff]   ;;  %v1328_v3 = vld [vmem:[%s1728_s0 + $0x84] ss:$8 sps:$4 sm:$0xff]  }
  0x16   :  { %764 = vmatprep.subr.bf16.mxu0 %v89_v34  ;;  %v1335_v7 = vld [vmem:[%s1728_s0 + $0x80] ss:$8 sps:$4 sm:$0xff]   ;;  %v1340_v8 = vld [vmem:[%s1728_s0 + $0x94] ss:$8 sps:$4 sm:$0xff]   ;;  %v1347_v13 = vld [vmem:[%s1728_s0 + $0x90] ss:$8 sps:$4 sm:$0xff]  }
  0x17   :  { %v1352_v14 = vld [vmem:[%s1728_s0 + $0xa4] ss:$8 sps:$4 sm:$0xff]   ;;  %v1359_v19 = vld [vmem:[%s1728_s0 + $0xa0] ss:$8 sps:$4 sm:$0xff]   ;;  %v1364_v20 = vld [vmem:[%s1728_s0 + $0xb4] ss:$8 sps:$4 sm:$0xff]  }
  0x18   :  { %v1371_v25 = vld [vmem:[%s1728_s0 + $0xb0] ss:$8 sps:$4 sm:$0xff]   ;;  %v1376_v26 = vld [vmem:[%s1728_s0 + $0xc4] ss:$8 sps:$4 sm:$0xff]   ;;  %v1383_v28 = vld [vmem:[%s1728_s0 + $0xc0] ss:$8 sps:$4 sm:$0xff]  }
  0x19   :  { %765 = vmatpush3.bf16.msra.mxu0 %v81_v38  ;;  %v1388_v32 = vld [vmem:[%s1728_s0 + $0xd4] ss:$8 sps:$4 sm:$0xff]   ;;  %v1395_v34 = vld [vmem:[%s1728_s0 + $0xd0] ss:$8 sps:$4 sm:$0xff]   ;;  %v1400_v38 = vld [vmem:[%s1728_s0 + $0xe4] ss:$8 sps:$4 sm:$0xff]  }
  0x1a   :  { %766 = vmatprep.subr.bf16.mxu0 %v90_v40  ;;  %v1407_v40 = vld [vmem:[%s1728_s0 + $0xe0] ss:$8 sps:$4 sm:$0xff]  }
  0x1d   :  { %767 = vmatpush3.bf16.msra.mxu0 %v82_v44  ;;  %v1412_v44 = vld [vmem:[%s1728_s0 + $0xf4] ss:$8 sps:$4 sm:$0xff]  }
  0x1e   :  { %768 = vmatprep.subr.bf16.mxu0 %v91_v46  ;;  %v1419_v46 = vld [vmem:[%s1728_s0 + $0xf0] ss:$8 sps:$4 sm:$0xff]  }
  0x21   :  { %769 = vmatpush3.bf16.msra.mxu0 %v83_v48 }
  0x24   :  { %285 = vmatmul.mubr.bf16.vlgmr.msra.gmra.mrb[0].mxu0 %v1239_v49 }
  0x25   :  { %292 = vmatprep.mubr.bf16.mxu0 %v1244_v50 }
  0x2c   :  { %293 = vmatmul.mubr.bf16.gmra.mrb[4].mxu0 %v1251_v51 }
  0x2d   :  { %300 = vmatprep.mubr.bf16.mxu0 %v1256_v52 }
  0x34   :  { %301 = vmatmul.mubr.bf16.gmra.mrb[8].mxu0 %v1263_v53 }
  0x35   :  { %308 = vmatprep.mubr.bf16.mxu0 %v1268_v54 }
  0x3c   :  { %309 = vmatmul.mubr.bf16.gmra.mrb[12].mxu0 %v1275_v55 }
  0x3d   :  { %316 = vmatprep.mubr.bf16.mxu0 %v1280_v56 }
  0x44   :  { %317 = vmatmul.mubr.bf16.gmra.mrb[16].mxu0 %v1287_v57 }
  0x45   :  { %324 = vmatprep.mubr.bf16.mxu0 %v1292_v58 }
  0x4c   :  { %325 = vmatmul.mubr.bf16.gmra.mrb[20].mxu0 %v1299_v59 }
  0x4d   :  { %332 = vmatprep.mubr.bf16.mxu0 %v1304_v60 }
  0x54   :  { %333 = vmatmul.mubr.bf16.gmra.mrb[24].mxu0 %v1311_v61 }
  0x55   :  { %340 = vmatprep.mubr.bf16.mxu0 %v1316_v62 }
  0x5c   :  { %341 = vmatmul.mubr.bf16.gmra.mrb[28].mxu0 %v1323_v63 }
  0x5d   :  { %348 = vmatprep.mubr.bf16.mxu0 %v1328_v3 }
  0x64   :  { %349 = vmatmul.mubr.bf16.gmra.mrb[32].mxu0 %v1335_v7 }
  0x65   :  { %356 = vmatprep.mubr.bf16.mxu0 %v1340_v8 }
  0x6c   :  { %357 = vmatmul.mubr.bf16.gmra.mrb[36].mxu0 %v1347_v13 }
  0x6d   :  { %364 = vmatprep.mubr.bf16.mxu0 %v1352_v14 }
  0x74   :  { %365 = vmatmul.mubr.bf16.gmra.mrb[40].mxu0 %v1359_v19 }
  0x75   :  { %372 = vmatprep.mubr.bf16.mxu0 %v1364_v20 }
  0x7c   :  { %373 = vmatmul.mubr.bf16.gmra.mrb[44].mxu0 %v1371_v25 }
  0x7d   :  { %380 = vmatprep.mubr.bf16.mxu0 %v1376_v26 }
  0x84   :  { %381 = vmatmul.mubr.bf16.gmra.mrb[48].mxu0 %v1383_v28 }
  0x85   :  { %388 = vmatprep.mubr.bf16.mxu0 %v1388_v32 }
  0x8c   :  { %389 = vmatmul.mubr.bf16.gmra.mrb[52].mxu0 %v1395_v34 }
  0x8d   :  { %396 = vmatprep.mubr.bf16.mxu0 %v1400_v38 }
  0x94   :  { %397 = vmatmul.mubr.bf16.gmra.mrb[56].mxu0 %v1407_v40 }
  0x95   :  { %404 = vmatprep.mubr.bf16.mxu0 %v1412_v44 }
  0x9c   :  { %405 = vmatmul.mubr.bf16.gmra.mrb[60].mxu0 %v1419_v46 }
  0xf7   :  { %v770_v48 = vpop.f32.mrb[0].mxu0 }
  0xf8   :  { %v771_v43 = vpop.f32.mrb[1].mxu0 }
  0xf9   :  { %v1422_v42 = vadd.f32 %v771_v43, %v770_v48  ;;  %v773_v37 = vpop.f32.mrb[2].mxu0 }
  0xfa   :  { %v774_v36 = vpop.f32.mrb[3].mxu0 }
  0xfb   :  { %v1424_v31 = vadd.f32 %v774_v36, %v773_v37 }
  0xfd   :  { %v445_v30 = vpack.c.bf16 %v1424_v31, %v1422_v42 }
  0xff   :  { %v776_v24 = vpop.f32.mrb[4].mxu0 }
 0x100   :  { %v777_v23 = vpop.f32.mrb[5].mxu0 }
 0x101   :  { %v1428_v18 = vadd.f32 %v777_v23, %v776_v24  ;;  %v779_v17 = vpop.f32.mrb[6].mxu0 }
 0x102   :  { %v780_v12 = vpop.f32.mrb[7].mxu0 }
 0x103   :  { %v1430_v11 = vadd.f32 %v780_v12, %v779_v17 }
 0x105   :  { %1799 = vst [vmem:[#allocation31_spill] sm:$0xff] %v1430_v11  ;;  %v446_v6 = vpack.c.bf16 %v1430_v11, %v1428_v18 }
 0x107   :  { %v782_v43 = vpop.f32.mrb[8].mxu0 }
 0x108   :  { %v783_v48 = vpop.f32.mrb[9].mxu0 }
 0x109   :  { %v1434_v5 = vadd.f32 %v783_v48, %v782_v43  ;;  %v785_v36 = vpop.f32.mrb[10].mxu0 }
 0x10a   :  { %v786_v37 = vpop.f32.mrb[11].mxu0 }
 0x10b   :  { %v1436_v1 = vadd.f32 %v786_v37, %v785_v36 }
 0x10f   :  { %v788_v23 = vpop.f32.mrb[12].mxu0 }
 0x110   :  { %v789_v24 = vpop.f32.mrb[13].mxu0 }
 0x111   :  { %v1440_v47 = vadd.f32 %v789_v24, %v788_v23  ;;  %v791_v12 = vpop.f32.mrb[14].mxu0 }
 0x112   :  { %v792_v17 = vpop.f32.mrb[15].mxu0 }
 0x113   :  { %v1442_v45 = vadd.f32 %v792_v17, %v791_v12 }
 0x117   :  { %v794_v43 = vpop.f32.mrb[16].mxu0 }
 0x118   :  { %v795_v48 = vpop.f32.mrb[17].mxu0 }
 0x119   :  { %v1446_v39 = vadd.f32 %v795_v48, %v794_v43  ;;  %v797_v36 = vpop.f32.mrb[18].mxu0 }
 0x11a   :  { %v798_v37 = vpop.f32.mrb[19].mxu0 }
 0x11b   :  { %v1448_v35 = vadd.f32 %v798_v37, %v797_v36 }
 0x11f   :  { %v800_v23 = vpop.f32.mrb[20].mxu0 }
 0x120   :  { %v801_v24 = vpop.f32.mrb[21].mxu0 }
 0x121   :  { %v1452_v33 = vadd.f32 %v801_v24, %v800_v23  ;;  %v803_v12 = vpop.f32.mrb[22].mxu0 }
 0x122   :  { %v804_v17 = vpop.f32.mrb[23].mxu0 }
 0x123   :  { %v1454_v29 = vadd.f32 %v804_v17, %v803_v12 }
 0x127   :  { %v806_v43 = vpop.f32.mrb[24].mxu0 }
 0x128   :  { %v807_v48 = vpop.f32.mrb[25].mxu0 }
 0x129   :  { %v1458_v27 = vadd.f32 %v807_v48, %v806_v43  ;;  %v809_v36 = vpop.f32.mrb[26].mxu0 }
 0x12a   :  { %v810_v37 = vpop.f32.mrb[27].mxu0 }
 0x12b   :  { %v1460_v22 = vadd.f32 %v810_v37, %v809_v36 }
 0x12f   :  { %v812_v23 = vpop.f32.mrb[28].mxu0 }
 0x130   :  { %v813_v24 = vpop.f32.mrb[29].mxu0 }
 0x131   :  { %v1464_v21 = vadd.f32 %v813_v24, %v812_v23  ;;  %v815_v12 = vpop.f32.mrb[30].mxu0 }
 0x132   :  { %v816_v17 = vpop.f32.mrb[31].mxu0 }
 0x133   :  { %v1466_v16 = vadd.f32 %v816_v17, %v815_v12 }
 0x137   :  { %v818_v43 = vpop.f32.mrb[32].mxu0 }
 0x138   :  { %v819_v48 = vpop.f32.mrb[33].mxu0 }
 0x139   :  { %v1470_v15 = vadd.f32 %v819_v48, %v818_v43  ;;  %v821_v36 = vpop.f32.mrb[34].mxu0 }
 0x13a   :  { %v822_v37 = vpop.f32.mrb[35].mxu0 }
 0x13b   :  { %1800 = vst [vmem:[#allocation32_spill] sm:$0xff] %v1470_v15  ;;  %v1472_v11 = vadd.f32 %v822_v37, %v821_v36 }
 0x13d   :  { %1801 = vst [vmem:[#allocation33_spill] sm:$0xff] %v1472_v11  ;;  %v453_v0 = vpack.c.bf16 %v1472_v11, %v1470_v15 }
 0x13f   :  { %v824_v23 = vpop.f32.mrb[36].mxu0  ;;  %866 = vmatprep.subr.bf16.mxu1 %v453_v0 }
 0x140   :  { %v825_v24 = vpop.f32.mrb[37].mxu0  ;;  %867 = vmatpush3.bf16.msra.mxu1 %v445_v30 }
 0x141   :  { %v1476_v12 = vadd.f32 %v825_v24, %v824_v23  ;;  %v827_v17 = vpop.f32.mrb[38].mxu0  ;;  %v1804_v24 = vpack.c.bf16 %v1436_v1, %v1434_v5 }
 0x142   :  { %v828_v10 = vpop.f32.mrb[39].mxu0 }
 0x143   :  { %v1478_v41 = vadd.f32 %v828_v10, %v827_v17 }
 0x145   :  { %v454_v43 = vpack.c.bf16 %v1478_v41, %v1476_v12 }
 0x147   :  { %v830_v48 = vpop.f32.mrb[40].mxu0  ;;  %868 = vmatprep.subr.bf16.mxu1 %v454_v43 }
 0x148   :  { %v831_v36 = vpop.f32.mrb[41].mxu0  ;;  %869 = vmatpush3.bf16.msra.mxu1 %v446_v6 }
 0x149   :  { %v1482_v37 = vadd.f32 %v831_v36, %v830_v48  ;;  %v833_v11 = vpop.f32.mrb[42].mxu0 }
 0x14a   :  { %v834_v15 = vpop.f32.mrb[43].mxu0 }
 0x14b   :  { %1802 = vst [vmem:[#allocation34_spill] sm:$0xff] %v1482_v37  ;;  %v1484_v0 = vadd.f32 %v834_v15, %v833_v11 }
 0x14d   :  { %1803 = vst [vmem:[#allocation35_spill] sm:$0xff] %v1484_v0  ;;  %v455_v30 = vpack.c.bf16 %v1484_v0, %v1482_v37 }
 0x14f   :  { %v836_v23 = vpop.f32.mrb[44].mxu0  ;;  %870 = vmatprep.subr.bf16.mxu1 %v455_v30  ;;  %v1807_v30 = vpack.c.bf16 %v1442_v45, %v1440_v47 }
 0x150   :  { %v837_v10 = vpop.f32.mrb[45].mxu0  ;;  %871 = vmatpush3.bf16.msra.mxu1 %v1804_v24 }
 0x151   :  { %v1491_v17 = vadd.f32 %v837_v10, %v836_v23  ;;  %v839_v43 = vpop.f32.mrb[46].mxu0 }
 0x152   :  { %v840_v6 = vpop.f32.mrb[47].mxu0 }
 0x153   :  { %1805 = vst [vmem:[#allocation36_spill] sm:$0xff] %v1491_v17  ;;  %v1493_v48 = vadd.f32 %v840_v6, %v839_v43 }
 0x155   :  { %1806 = vst [vmem:[#allocation37_spill] sm:$0xff] %v1493_v48  ;;  %v456_v11 = vpack.c.bf16 %v1493_v48, %v1491_v17 }
 0x157   :  { %v842_v15 = vpop.f32.mrb[48].mxu0  ;;  %872 = vmatprep.subr.bf16.mxu1 %v456_v11  ;;  %v1810_v11 = vpack.c.bf16 %v1448_v35, %v1446_v39 }
 0x158   :  { %v843_v36 = vpop.f32.mrb[49].mxu0  ;;  %873 = vmatpush3.bf16.msra.mxu1 %v1807_v30 }
 0x159   :  { %v1500_v0 = vadd.f32 %v843_v36, %v842_v15  ;;  %v845_v37 = vpop.f32.mrb[50].mxu0 }
 0x15a   :  { %v846_v24 = vpop.f32.mrb[51].mxu0 }
 0x15b   :  { %1808 = vst [vmem:[#allocation38_spill] sm:$0xff] %v1500_v0  ;;  %v1502_v23 = vadd.f32 %v846_v24, %v845_v37 }
 0x15d   :  { %1809 = vst [vmem:[#allocation39_spill] sm:$0xff] %v1502_v23  ;;  %v457_v10 = vpack.c.bf16 %v1502_v23, %v1500_v0 }
 0x15f   :  { %v848_v43 = vpop.f32.mrb[52].mxu0  ;;  %874 = vmatprep.subr.bf16.mxu1 %v457_v10  ;;  %v1813_v10 = vpack.c.bf16 %v1454_v29, %v1452_v33 }
 0x160   :  { %v849_v6 = vpop.f32.mrb[53].mxu0  ;;  %875 = vmatpush3.bf16.msra.mxu1 %v1810_v11 }
 0x161   :  { %v1509_v48 = vadd.f32 %v849_v6, %v848_v43  ;;  %v851_v17 = vpop.f32.mrb[54].mxu0 }
 0x162   :  { %v852_v30 = vpop.f32.mrb[55].mxu0 }
 0x163   :  { %1811 = vst [vmem:[#allocation40_spill] sm:$0xff] %v1509_v48  ;;  %v1511_v15 = vadd.f32 %v852_v30, %v851_v17 }
 0x165   :  { %1812 = vst [vmem:[#allocation41_spill] sm:$0xff] %v1511_v15  ;;  %v458_v37 = vpack.c.bf16 %v1511_v15, %v1509_v48 }
 0x167   :  { %v854_v36 = vpop.f32.mrb[56].mxu0  ;;  %876 = vmatprep.subr.bf16.mxu1 %v458_v37  ;;  %v1814_v37 = vpack.c.bf16 %v1460_v22, %v1458_v27 }
 0x168   :  { %v855_v24 = vpop.f32.mrb[57].mxu0  ;;  %877 = vmatpush3.bf16.msra.mxu1 %v1813_v10 }
 0x169   :  { %v1518_v23 = vadd.f32 %v855_v24, %v854_v36  ;;  %v857_v0 = vpop.f32.mrb[58].mxu0  ;;  %v1815_v24 = vpack.c.bf16 %v1466_v16, %v1464_v21 }
 0x16a   :  { %v858_v11 = vpop.f32.mrb[59].mxu0 }
 0x16b   :  { %v1520_v43 = vadd.f32 %v858_v11, %v857_v0 }
 0x16d   :  { %v459_v17 = vpack.c.bf16 %v1520_v43, %v1518_v23 }
 0x16f   :  { %v860_v6 = vpop.f32.mrb[60].mxu0  ;;  %878 = vmatprep.subr.bf16.mxu1 %v459_v17 }
 0x170   :  { %v861_v30 = vpop.f32.mrb[61].mxu0  ;;  %879 = vmatpush3.bf16.msra.mxu1 %v1814_v37 }
 0x171   :  { %v1527_v15 = vadd.f32 %v861_v30, %v860_v6  ;;  %v863_v48 = vpop.f32.mrb[62].mxu0  ;;  %v1820_v30 = vld [vmem:[#allocation13_spill] sm:$0xff] }
 0x172   :  { %v864_v10 = vpop.f32.mrb[63].mxu0  ;;  %v419_v37 = vadd.f32 %v1440_v47, %v1820_v30 }
 0x173   :  { %v1529_v36 = vadd.f32 %v864_v10, %v863_v48 }
 0x175   :  { %v460_v0 = vpack.c.bf16 %v1529_v36, %v1527_v15 }
 0x177   :  { %880 = vmatprep.subr.bf16.mxu1 %v460_v0 }
 0x178   :  { %881 = vmatpush3.bf16.msra.mxu1 %v1815_v24  ;;  %v1821_v24 = vld [vmem:[#allocation14_spill] sm:$0xff] }
 0x17b   :  { %494 = vmatmul.mubr.bf16.vlgmr.msra.gmra.mrb[0].mxu1 %v1239_v49 }
 0x17c   :  { %501 = vmatprep.mubr.bf16.mxu1 %v1244_v50 }
 0x183   :  { %502 = vmatmul.mubr.bf16.gmra.mrb[4].mxu1 %v1251_v51  ;;  %v413_v51 = vadd.f32 %v1422_v42, %v1054_v2  ;;  %v415_v2 = vadd.f32 %v1428_v18, %v1080_v9 }
 0x184   :  { %509 = vmatprep.mubr.bf16.mxu1 %v1256_v52 }
 0x18b   :  { %510 = vmatmul.mubr.bf16.gmra.mrb[8].mxu1 %v1263_v53 }
 0x18c   :  { %517 = vmatprep.mubr.bf16.mxu1 %v1268_v54 }
 0x193   :  { %518 = vmatmul.mubr.bf16.gmra.mrb[12].mxu1 %v1275_v55  ;;  %v414_v55 = vadd.f32 %v1424_v31, %v1061_v4 }
 0x194   :  { %525 = vmatprep.mubr.bf16.mxu1 %v1280_v56 }
 0x19b   :  { %526 = vmatmul.mubr.bf16.gmra.mrb[16].mxu1 %v1287_v57 }
 0x19c   :  { %533 = vmatprep.mubr.bf16.mxu1 %v1292_v58 }
 0x1a3   :  { %534 = vmatmul.mubr.bf16.gmra.mrb[20].mxu1 %v1299_v59 }
 0x1a4   :  { %541 = vmatprep.mubr.bf16.mxu1 %v1304_v60 }
 0x1ab   :  { %542 = vmatmul.mubr.bf16.gmra.mrb[24].mxu1 %v1311_v61 }
 0x1ac   :  { %549 = vmatprep.mubr.bf16.mxu1 %v1316_v62 }
 0x1b3   :  { %550 = vmatmul.mubr.bf16.gmra.mrb[28].mxu1 %v1323_v63  ;;  %v1816_v63 = vld [vmem:[#allocation6_spill] sm:$0xff] }
 0x1b4   :  { %557 = vmatprep.mubr.bf16.mxu1 %v1328_v3  ;;  %v1817_v3 = vld [vmem:[#allocation31_spill] sm:$0xff] }
 0x1bb   :  { %558 = vmatmul.mubr.bf16.gmra.mrb[32].mxu1 %v1335_v7  ;;  %v416_v7 = vadd.f32 %v1817_v3, %v1816_v63  ;;  %v1824_v3 = vld [vmem:[#allocation21_spill] sm:$0xff] }
 0x1bc   :  { %565 = vmatprep.mubr.bf16.mxu1 %v1340_v8 }
 0x1c3   :  { %566 = vmatmul.mubr.bf16.gmra.mrb[36].mxu1 %v1347_v13 }
 0x1c4   :  { %573 = vmatprep.mubr.bf16.mxu1 %v1352_v14 }
 0x1cb   :  { %574 = vmatmul.mubr.bf16.gmra.mrb[40].mxu1 %v1359_v19 }
 0x1cc   :  { %581 = vmatprep.mubr.bf16.mxu1 %v1364_v20 }
 0x1d3   :  { %582 = vmatmul.mubr.bf16.gmra.mrb[44].mxu1 %v1371_v25  ;;  %v1818_v25 = vld [vmem:[#allocation9_spill] sm:$0xff] }
 0x1d4   :  { %589 = vmatprep.mubr.bf16.mxu1 %v1376_v26  ;;  %v417_v26 = vadd.f32 %v1434_v5, %v1818_v25 }
 0x1db   :  { %590 = vmatmul.mubr.bf16.gmra.mrb[48].mxu1 %v1383_v28 }
 0x1dc   :  { %597 = vmatprep.mubr.bf16.mxu1 %v1388_v32 }
 0x1e3   :  { %598 = vmatmul.mubr.bf16.gmra.mrb[52].mxu1 %v1395_v34 }
 0x1e4   :  { %605 = vmatprep.mubr.bf16.mxu1 %v1400_v38  ;;  %v1819_v38 = vld [vmem:[#allocation10_spill] sm:$0xff] }
 0x1eb   :  { %606 = vmatmul.mubr.bf16.gmra.mrb[56].mxu1 %v1407_v40  ;;  %v418_v40 = vadd.f32 %v1436_v1, %v1819_v38 }
 0x1ec   :  { %613 = vmatprep.mubr.bf16.mxu1 %v1412_v44 }
 0x1f3   :  { %614 = vmatmul.mubr.bf16.gmra.mrb[60].mxu1 %v1419_v46 }
 0x24e   :  { %v882_v49 = vpop.f32.mrb[0].mxu1 }
 0x24f   :  { %v883_v50 = vpop.f32.mrb[1].mxu1 }
 0x250   :  { %v884_v52 = vadd.f32 %v883_v50, %v882_v49  ;;  %v885_v53 = vpop.f32.mrb[2].mxu1  ;;  %v420_v49 = vadd.f32 %v1442_v45, %v1821_v24  ;;  %v1829_v24 = vld [vmem:[#allocation30_spill] sm:$0xff] }
 0x251   :  { %v886_v54 = vpop.f32.mrb[3].mxu1 }
 0x252   :  { %v622_v56 = vadd.f32 %v884_v52, %v413_v51  ;;  %v887_v57 = vadd.f32 %v886_v54, %v885_v53 }
 0x254   :  { %v654_v58 = vmul.f32 0.33333334, %v622_v56  ;;  %v623_v59 = vadd.f32 %v887_v57, %v414_v55  ;;  %v1822_v56 = vld [vmem:[#allocation17_spill] sm:$0xff] }
 0x255   :  { %v421_v57 = vadd.f32 %v1446_v39, %v1822_v56  ;;  %v1831_v56 = vld [vmem:[#allocation32_spill] sm:$0xff] }
 0x256   :  { %686 = vst [vmem:[%s1729_s2] sm:$0xff] %v654_v58  ;;  %v655_v60 = vmul.f32 0.33333334, %v623_v59  ;;  %v888_v61 = vpop.f32.mrb[4].mxu1 }
 0x257   :  { %v889_v62 = vpop.f32.mrb[5].mxu1 }
 0x258   :  { %687 = vst [vmem:[%s1729_s2 + $0x8] sm:$0xff] %v655_v60  ;;  %v890_v42 = vadd.f32 %v889_v62, %v888_v61  ;;  %v891_v4 = vpop.f32.mrb[6].mxu1  ;;  %v1823_v60 = vld [vmem:[#allocation18_spill] sm:$0xff] }
 0x259   :  { %v892_v31 = vpop.f32.mrb[7].mxu1  ;;  %v422_v61 = vadd.f32 %v1448_v35, %v1823_v60  ;;  %v1833_v60 = vld [vmem:[#allocation33_spill] sm:$0xff] }
 0x25a   :  { %v624_v8 = vadd.f32 %v890_v42, %v415_v2  ;;  %v893_v13 = vadd.f32 %v892_v31, %v891_v4 }
 0x25c   :  { %v656_v14 = vmul.f32 0.33333334, %v624_v8  ;;  %v625_v19 = vadd.f32 %v893_v13, %v416_v7  ;;  %v423_v7 = vadd.f32 %v1452_v33, %v1824_v3  ;;  %v1834_v3 = vld [vmem:[#allocation4_spill] sm:$0xff] }
 0x25e   :  { %688 = vst [vmem:[%s1729_s2 + $0x10] sm:$0xff] %v656_v14  ;;  %v657_v20 = vmul.f32 0.33333334, %v625_v19  ;;  %v894_v9 = vpop.f32.mrb[8].mxu1  ;;  %v1825_v14 = vld [vmem:[#allocation22_spill] sm:$0xff] }
 0x25f   :  { %v895_v18 = vpop.f32.mrb[9].mxu1  ;;  %v424_v19 = vadd.f32 %v1454_v29, %v1825_v14  ;;  %v1835_v14 = vld [vmem:[#allocation5_spill] sm:$0xff] }
 0x260   :  { %689 = vst [vmem:[%s1729_s2 + $0x18] sm:$0xff] %v657_v20  ;;  %v896_v28 = vadd.f32 %v895_v18, %v894_v9  ;;  %v897_v32 = vpop.f32.mrb[10].mxu1 }
 0x261   :  { %v898_v34 = vpop.f32.mrb[11].mxu1 }
 0x262   :  { %v626_v44 = vadd.f32 %v896_v28, %v417_v26  ;;  %v899_v46 = vadd.f32 %v898_v34, %v897_v32  ;;  %v1826_v32 = vld [vmem:[#allocation25_spill] sm:$0xff] }
 0x263   :  { %v425_v34 = vadd.f32 %v1458_v27, %v1826_v32  ;;  %v1837_v32 = vld [vmem:[#allocation34_spill] sm:$0xff] }
 0x264   :  { %v658_v48 = vmul.f32 0.33333334, %v626_v44  ;;  %v627_v11 = vadd.f32 %v899_v46, %v418_v40  ;;  %v1827_v44 = vld [vmem:[#allocation26_spill] sm:$0xff] }
 0x265   :  { %v426_v46 = vadd.f32 %v1460_v22, %v1827_v44  ;;  %v1839_v44 = vld [vmem:[#allocation35_spill] sm:$0xff] }
 0x266   :  { %690 = vst [vmem:[%s1729_s2 + $0x20] sm:$0xff] %v658_v48  ;;  %v659_v17 = vmul.f32 0.33333334, %v627_v11  ;;  %v900_v5 = vpop.f32.mrb[12].mxu1 }
 0x267   :  { %v901_v6 = vpop.f32.mrb[13].mxu1 }
 0x268   :  { %691 = vst [vmem:[%s1729_s2 + $0x28] sm:$0xff] %v659_v17  ;;  %v902_v10 = vadd.f32 %v901_v6, %v900_v5  ;;  %v903_v1 = vpop.f32.mrb[14].mxu1 }
 0x269   :  { %v904_v0 = vpop.f32.mrb[15].mxu1 }
 0x26a   :  { %v628_v50 = vadd.f32 %v902_v10, %v419_v37  ;;  %v905_v51 = vadd.f32 %v904_v0, %v903_v1  ;;  %v1828_v37 = vld [vmem:[#allocation29_spill] sm:$0xff] }
 0x26b   :  { %v427_v10 = vadd.f32 %v1464_v21, %v1828_v37  ;;  %v1840_v37 = vld [vmem:[#allocation11_spill] sm:$0xff] }
 0x26c   :  { %v660_v52 = vmul.f32 0.33333334, %v628_v50  ;;  %v629_v53 = vadd.f32 %v905_v51, %v420_v49  ;;  %v428_v49 = vadd.f32 %v1466_v16, %v1829_v24 }
 0x26e   :  { %692 = vst [vmem:[%s1729_s2 + $0x30] sm:$0xff] %v660_v52  ;;  %v661_v54 = vmul.f32 0.33333334, %v629_v53  ;;  %v906_v47 = vpop.f32.mrb[16].mxu1 }
 0x26f   :  { %v907_v55 = vpop.f32.mrb[17].mxu1 }
 0x270   :  { %693 = vst [vmem:[%s1729_s2 + $0x38] sm:$0xff] %v661_v54  ;;  %v908_v58 = vadd.f32 %v907_v55, %v906_v47  ;;  %v909_v45 = vpop.f32.mrb[18].mxu1  ;;  %v1830_v55 = vld [vmem:[#allocation2_spill] sm:$0xff] }
 0x271   :  { %v910_v59 = vpop.f32.mrb[19].mxu1 }
 0x272   :  { %v630_v62 = vadd.f32 %v908_v58, %v421_v57  ;;  %v911_v2 = vadd.f32 %v910_v59, %v909_v45  ;;  %v429_v57 = vadd.f32 %v1831_v56, %v1830_v55  ;;  %v1832_v59 = vld [vmem:[#allocation3_spill] sm:$0xff] }
 0x274   :  { %v662_v42 = vmul.f32 0.33333334, %v630_v62  ;;  %v631_v4 = vadd.f32 %v911_v2, %v422_v61  ;;  %v430_v61 = vadd.f32 %v1833_v60, %v1832_v59 }
 0x276   :  { %694 = vst [vmem:[%s1729_s2 + $0x40] sm:$0xff] %v662_v42  ;;  %v663_v31 = vmul.f32 0.33333334, %v631_v4  ;;  %v912_v39 = vpop.f32.mrb[20].mxu1 }
 0x277   :  { %v913_v63 = vpop.f32.mrb[21].mxu1 }
 0x278   :  { %695 = vst [vmem:[%s1729_s2 + $0x48] sm:$0xff] %v663_v31  ;;  %v914_v8 = vadd.f32 %v913_v63, %v912_v39  ;;  %v915_v35 = vpop.f32.mrb[22].mxu1 }
 0x279   :  { %v916_v13 = vpop.f32.mrb[23].mxu1 }
 0x27a   :  { %v632_v20 = vadd.f32 %v914_v8, %v423_v7  ;;  %v917_v9 = vadd.f32 %v916_v13, %v915_v35  ;;  %v431_v7 = vadd.f32 %v1476_v12, %v1834_v3 }
 0x27c   :  { %v664_v18 = vmul.f32 0.33333334, %v632_v20  ;;  %v633_v25 = vadd.f32 %v917_v9, %v424_v19  ;;  %v432_v19 = vadd.f32 %v1478_v41, %v1835_v14 }
 0x27e   :  { %696 = vst [vmem:[%s1729_s2 + $0x50] sm:$0xff] %v664_v18  ;;  %v665_v26 = vmul.f32 0.33333334, %v633_v25  ;;  %v918_v33 = vpop.f32.mrb[24].mxu1 }
 0x27f   :  { %v919_v28 = vpop.f32.mrb[25].mxu1 }
 0x280   :  { %697 = vst [vmem:[%s1729_s2 + $0x58] sm:$0xff] %v665_v26  ;;  %v920_v38 = vadd.f32 %v919_v28, %v918_v33  ;;  %v921_v29 = vpop.f32.mrb[26].mxu1  ;;  %v1836_v28 = vld [vmem:[#allocation7_spill] sm:$0xff] }
 0x281   :  { %v922_v40 = vpop.f32.mrb[27].mxu1 }
 0x282   :  { %v634_v48 = vadd.f32 %v920_v38, %v425_v34  ;;  %v923_v11 = vadd.f32 %v922_v40, %v921_v29  ;;  %v433_v34 = vadd.f32 %v1837_v32, %v1836_v28  ;;  %v1838_v40 = vld [vmem:[#allocation8_spill] sm:$0xff] }
 0x284   :  { %v666_v17 = vmul.f32 0.33333334, %v634_v48  ;;  %v635_v5 = vadd.f32 %v923_v11, %v426_v46  ;;  %v434_v46 = vadd.f32 %v1839_v44, %v1838_v40 }
 0x286   :  { %698 = vst [vmem:[%s1729_s2 + $0x60] sm:$0xff] %v666_v17  ;;  %v667_v6 = vmul.f32 0.33333334, %v635_v5  ;;  %v924_v27 = vpop.f32.mrb[28].mxu1 }
 0x287   :  { %v925_v30 = vpop.f32.mrb[29].mxu1 }
 0x288   :  { %699 = vst [vmem:[%s1729_s2 + $0x68] sm:$0xff] %v667_v6  ;;  %v926_v1 = vadd.f32 %v925_v30, %v924_v27  ;;  %v927_v22 = vpop.f32.mrb[30].mxu1 }
 0x289   :  { %v928_v0 = vpop.f32.mrb[31].mxu1 }
 0x28a   :  { %v636_v50 = vadd.f32 %v926_v1, %v427_v10  ;;  %v929_v51 = vadd.f32 %v928_v0, %v927_v22  ;;  %v1841_v10 = vld [vmem:[#allocation36_spill] sm:$0xff] }
 0x28b   :  { %v435_v1 = vadd.f32 %v1841_v10, %v1840_v37  ;;  %v1854_v10 = vld [vmem:[#allocation27_spill] sm:$0xff] }
 0x28c   :  { %v668_v52 = vmul.f32 0.33333334, %v636_v50  ;;  %v637_v53 = vadd.f32 %v929_v51, %v428_v49  ;;  %v1842_v49 = vld [vmem:[#allocation12_spill] sm:$0xff]  ;;  %v1843_v50 = vld [vmem:[#allocation37_spill] sm:$0xff] }
 0x28d   :  { %v436_v51 = vadd.f32 %v1843_v50, %v1842_v49 }
 0x28e   :  { %700 = vst [vmem:[%s1729_s2 + $0x70] sm:$0xff] %v668_v52  ;;  %v669_v54 = vmul.f32 0.33333334, %v637_v53  ;;  %v930_v21 = vpop.f32.mrb[32].mxu1 }
 0x28f   :  { %v931_v47 = vpop.f32.mrb[33].mxu1 }
 0x290   :  { %701 = vst [vmem:[%s1729_s2 + $0x78] sm:$0xff] %v669_v54  ;;  %v932_v58 = vadd.f32 %v931_v47, %v930_v21  ;;  %v933_v16 = vpop.f32.mrb[34].mxu1 }
 0x291   :  { %v934_v45 = vpop.f32.mrb[35].mxu1 }
 0x292   :  { %v638_v62 = vadd.f32 %v932_v58, %v429_v57  ;;  %v935_v2 = vadd.f32 %v934_v45, %v933_v16  ;;  %v1844_v57 = vld [vmem:[#allocation15_spill] sm:$0xff]  ;;  %v1845_v58 = vld [vmem:[#allocation38_spill] sm:$0xff] }
 0x293   :  { %v437_v16 = vadd.f32 %v1845_v58, %v1844_v57 }
 0x294   :  { %v670_v42 = vmul.f32 0.33333334, %v638_v62  ;;  %v639_v4 = vadd.f32 %v935_v2, %v430_v61  ;;  %v1846_v61 = vld [vmem:[#allocation16_spill] sm:$0xff]  ;;  %v1847_v62 = vld [vmem:[#allocation39_spill] sm:$0xff] }
 0x295   :  { %v438_v2 = vadd.f32 %v1847_v62, %v1846_v61 }
 0x296   :  { %702 = vst [vmem:[%s1729_s2 + $0x80] sm:$0xff] %v670_v42  ;;  %v671_v31 = vmul.f32 0.33333334, %v639_v4  ;;  %v936_v39 = vpop.f32.mrb[36].mxu1 }
 0x297   :  { %v937_v63 = vpop.f32.mrb[37].mxu1 }
 0x298   :  { %703 = vst [vmem:[%s1729_s2 + $0x88] sm:$0xff] %v671_v31  ;;  %v938_v8 = vadd.f32 %v937_v63, %v936_v39  ;;  %v939_v35 = vpop.f32.mrb[38].mxu1 }
 0x299   :  { %v940_v13 = vpop.f32.mrb[39].mxu1 }
 0x29a   :  { %v640_v20 = vadd.f32 %v938_v8, %v431_v7  ;;  %v941_v9 = vadd.f32 %v940_v13, %v939_v35  ;;  %v1848_v8 = vld [vmem:[#allocation19_spill] sm:$0xff]  ;;  %v1849_v35 = vld [vmem:[#allocation40_spill] sm:$0xff] }
 0x29b   :  { %v439_v13 = vadd.f32 %v1849_v35, %v1848_v8 }
 0x29c   :  { %v672_v18 = vmul.f32 0.33333334, %v640_v20  ;;  %v641_v25 = vadd.f32 %v941_v9, %v432_v19  ;;  %v1850_v9 = vld [vmem:[#allocation20_spill] sm:$0xff] }
 0x29e   :  { %704 = vst [vmem:[%s1729_s2 + $0x90] sm:$0xff] %v672_v18  ;;  %v673_v26 = vmul.f32 0.33333334, %v641_v25  ;;  %v942_v12 = vpop.f32.mrb[40].mxu1  ;;  %v1851_v18 = vld [vmem:[#allocation41_spill] sm:$0xff] }
 0x29f   :  { %v943_v33 = vpop.f32.mrb[41].mxu1  ;;  %v440_v25 = vadd.f32 %v1851_v18, %v1850_v9 }
 0x2a0   :  { %705 = vst [vmem:[%s1729_s2 + $0x98] sm:$0xff] %v673_v26  ;;  %v944_v38 = vadd.f32 %v943_v33, %v942_v12  ;;  %v945_v41 = vpop.f32.mrb[42].mxu1 }
 0x2a1   :  { %v946_v29 = vpop.f32.mrb[43].mxu1 }
 0x2a2   :  { %v642_v48 = vadd.f32 %v944_v38, %v433_v34  ;;  %v947_v11 = vadd.f32 %v946_v29, %v945_v41  ;;  %v1852_v41 = vld [vmem:[#allocation23_spill] sm:$0xff] }
 0x2a3   :  { %v441_v29 = vadd.f32 %v1518_v23, %v1852_v41 }
 0x2a4   :  { %v674_v17 = vmul.f32 0.33333334, %v642_v48  ;;  %v643_v5 = vadd.f32 %v947_v11, %v434_v46  ;;  %v1853_v48 = vld [vmem:[#allocation24_spill] sm:$0xff] }
 0x2a5   :  { %v442_v11 = vadd.f32 %v1520_v43, %v1853_v48 }
 0x2a6   :  { %706 = vst [vmem:[%s1729_s2 + $0xa0] sm:$0xff] %v674_v17  ;;  %v675_v6 = vmul.f32 0.33333334, %v643_v5  ;;  %v948_v27 = vpop.f32.mrb[44].mxu1 }
 0x2a7   :  { %v949_v30 = vpop.f32.mrb[45].mxu1 }
 0x2a8   :  { %707 = vst [vmem:[%s1729_s2 + $0xa8] sm:$0xff] %v675_v6  ;;  %v950_v22 = vadd.f32 %v949_v30, %v948_v27  ;;  %v951_v0 = vpop.f32.mrb[46].mxu1 }
 0x2a9   :  { %v952_v24 = vpop.f32.mrb[47].mxu1 }
 0x2aa   :  { %v644_v52 = vadd.f32 %v950_v22, %v435_v1  ;;  %v953_v53 = vadd.f32 %v952_v24, %v951_v0  ;;  %v443_v1 = vadd.f32 %v1527_v15, %v1854_v10  ;;  %v1855_v24 = vld [vmem:[#allocation28_spill] sm:$0xff] }
 0x2ab   :  { %v444_v49 = vadd.f32 %v1529_v36, %v1855_v24 }
 0x2ac   :  { %v676_v54 = vmul.f32 0.33333334, %v644_v52  ;;  %v645_v21 = vadd.f32 %v953_v53, %v436_v51 }
 0x2ae   :  { %708 = vst [vmem:[%s1729_s2 + $0xb0] sm:$0xff] %v676_v54  ;;  %v677_v47 = vmul.f32 0.33333334, %v645_v21  ;;  %v954_v55 = vpop.f32.mrb[48].mxu1 }
 0x2af   :  { %v955_v56 = vpop.f32.mrb[49].mxu1 }
 0x2b0   :  { %709 = vst [vmem:[%s1729_s2 + $0xb8] sm:$0xff] %v677_v47  ;;  %v956_v45 = vadd.f32 %v955_v56, %v954_v55  ;;  %v957_v59 = vpop.f32.mrb[50].mxu1 }
 0x2b1   :  { %v958_v60 = vpop.f32.mrb[51].mxu1 }
 0x2b2   :  { %v646_v42 = vadd.f32 %v956_v45, %v437_v16  ;;  %v959_v4 = vadd.f32 %v958_v60, %v957_v59 }
 0x2b4   :  { %v678_v31 = vmul.f32 0.33333334, %v646_v42  ;;  %v647_v39 = vadd.f32 %v959_v4, %v438_v2 }
 0x2b6   :  { %710 = vst [vmem:[%s1729_s2 + $0xc0] sm:$0xff] %v678_v31  ;;  %v679_v63 = vmul.f32 0.33333334, %v647_v39  ;;  %v960_v3 = vpop.f32.mrb[52].mxu1 }
 0x2b7   :  { %v961_v7 = vpop.f32.mrb[53].mxu1 }
 0x2b8   :  { %711 = vst [vmem:[%s1729_s2 + $0xc8] sm:$0xff] %v679_v63  ;;  %v962_v14 = vadd.f32 %v961_v7, %v960_v3  ;;  %v963_v19 = vpop.f32.mrb[54].mxu1 }
 0x2b9   :  { %v964_v20 = vpop.f32.mrb[55].mxu1 }
 0x2ba   :  { %v648_v26 = vadd.f32 %v962_v14, %v439_v13  ;;  %v965_v12 = vadd.f32 %v964_v20, %v963_v19 }
 0x2bc   :  { %v680_v33 = vmul.f32 0.33333334, %v648_v26  ;;  %v649_v28 = vadd.f32 %v965_v12, %v440_v25 }
 0x2be   :  { %712 = vst [vmem:[%s1729_s2 + $0xd0] sm:$0xff] %v680_v33  ;;  %v681_v32 = vmul.f32 0.33333334, %v649_v28  ;;  %v966_v34 = vpop.f32.mrb[56].mxu1 }
 0x2bf   :  { %v967_v38 = vpop.f32.mrb[57].mxu1 }
 0x2c0   :  { %713 = vst [vmem:[%s1729_s2 + $0xd8] sm:$0xff] %v681_v32  ;;  %v968_v40 = vadd.f32 %v967_v38, %v966_v34  ;;  %v969_v44 = vpop.f32.mrb[58].mxu1 }
 0x2c1   :  { %v970_v46 = vpop.f32.mrb[59].mxu1 }
 0x2c2   :  { %v650_v17 = vadd.f32 %v968_v40, %v441_v29  ;;  %v971_v5 = vadd.f32 %v970_v46, %v969_v44 }
 0x2c4   :  { %v682_v6 = vmul.f32 0.33333334, %v650_v17  ;;  %v651_v27 = vadd.f32 %v971_v5, %v442_v11 }
 0x2c6   :  { %714 = vst [vmem:[%s1729_s2 + $0xe0] sm:$0xff] %v682_v6  ;;  %v683_v30 = vmul.f32 0.33333334, %v651_v27  ;;  %v972_v23 = vpop.f32.mrb[60].mxu1 }
 0x2c7   :  { %v973_v37 = vpop.f32.mrb[61].mxu1 }
 0x2c8   :  { %715 = vst [vmem:[%s1729_s2 + $0xe8] sm:$0xff] %v683_v30  ;;  %v974_v22 = vadd.f32 %v973_v37, %v972_v23  ;;  %v975_v43 = vpop.f32.mrb[62].mxu1 }
 0x2c9   :  { %v976_v0 = vpop.f32.mrb[63].mxu1 }
 0x2ca   :  { %v652_v50 = vadd.f32 %v974_v22, %v443_v1  ;;  %v977_v51 = vadd.f32 %v976_v0, %v975_v43 }
 0x2cc   :  { %v684_v52 = vmul.f32 0.33333334, %v652_v50  ;;  %v653_v53 = vadd.f32 %v977_v51, %v444_v49 }
 0x2ce   :  { %716 = vst [vmem:[%s1729_s2 + $0xf0] sm:$0xff] %v684_v52  ;;  %v685_v54 = vmul.f32 0.33333334, %v653_v53 }
 0x2d0   :  { %717 = vst [vmem:[%s1729_s2 + $0xf8] sm:$0xff] %v685_v54 }

</bundles_post_ra>
